<compile_context>
chip_gen: v7x
topology: tpu7x:2x2x1
jax: 0.10.0
libtpu: 0.0.40
codegen_flags: <defaults>
</compile_context>

<pallas_src>
import functools

import jax
import jax.numpy as jnp
import numpy as np
from jax.experimental import pallas as pl
from jax.experimental.pallas import tpu as pltpu


def _filtered_noise_kernel(coef_ref, noise_ref, mfull_ref, csfull_ref, d_ref,
                           out_ref):
    """One (TM, P*BS) row tile: filter pre-generated noise in the freq domain.

    Packed per-row layouts (P frames / row; each frame's spectrum packed as
    [Re(0..nf-1) | Im(1..nf-2)] = BS lanes, zero DC/Nyquist imag dropped):
      coef  @ [M | M_sw]      -> [ H    | H_sw ]
      noise @ [CS_rd | CS_is] -> [ N_rd | N_is ]
      Y = H*N_rd + H_sw*N_is  -> packed [Yr | Yi]
      out = Y @ D             (irfft back to time; noise_att folded into D)
    """
    f32 = jnp.float32
    mm_dtype = mfull_ref.dtype
    pw = d_ref.shape[0]  # P * block_size

    coef = coef_ref[...].astype(mm_dtype)
    noise = noise_ref[...].astype(mm_dtype)

    hh = jnp.dot(coef, mfull_ref[...], preferred_element_type=f32)   # (TM, 2*pw)
    nn = jnp.dot(noise, csfull_ref[...], preferred_element_type=f32)  # (TM, 2*pw)

    # Packed complex multiply, all-f32 elementwise (VPU-friendly on v5e too).
    y = hh[:, :pw] * nn[:, :pw] + hh[:, pw:] * nn[:, pw:]             # (TM, pw)

    out = jnp.dot(y.astype(d_ref.dtype), d_ref[...], preferred_element_type=f32)
    out_ref[...] = out.astype(out_ref.dtype)


def make_filtered_noise_params(filter_size, block_size, frames_per_row,
                               noise_att, basis_dtype):
    """Deterministic fused constants, packed P frames per row (block-diagonal)."""
    F, BS, P = filter_size, block_size, frames_per_row
    n_coef = F // 2 + 1
    nf = BS // 2 + 1

    # Built in float64 numpy for accuracy; tiny trace-time constants.
    n = np.arange(F, dtype=np.float64)
    hann = 0.5 * (1.0 - np.cos(2.0 * np.pi * n / F))   # torch.hann_window (periodic)
    window = np.roll(hann, F // 2)                     # .roll(F//2, -1)

    # coef (real one-sided spectrum, zero imag) -> time filter, window folded in.
    A_irfft = np.fft.irfft(np.eye(n_coef), n=F, axis=-1)        # (n_coef, F)
    W = A_irfft * window[None, :]

    # rfft basis for length-BS sequences (filter is zero past F -> rows [:F]).
    t = np.arange(BS, dtype=np.float64)[:, None]
    k = np.arange(nf, dtype=np.float64)[None, :]
    ang = 2.0 * np.pi * t * k / BS
    C = np.cos(ang)            # Re basis  (BS, nf)
    S = -np.sin(ang)           # Im basis  (BS, nf)

    M_r = W @ C[:F]            # (n_coef, nf)   Hr
    M_i = W @ S[:F]            # (n_coef, nf)   Hi (cols 0, nf-1 are exactly 0)

    # Per-frame packed layout drops the zero DC/Nyquist imag bins -> BS columns.
    M_frame = np.concatenate([M_r, M_i[:, 1:nf - 1]], axis=1)        # (n_coef, BS)
    Msw_frame = np.concatenate([M_i, M_r[:, 1:nf - 1]], axis=1)      # (n_coef, BS)
    CSrd_frame = np.concatenate([C, C[:, 1:nf - 1]], axis=1)         # (BS, BS)
    CSis_frame = np.concatenate([-S, S[:, 1:nf - 1]], axis=1)        # (BS, BS)

    # irfft of the packed [Yr | Yi'] spectrum; noise_att folded in (linear chain).
    eye_c = np.eye(nf, dtype=np.complex128)
    Dr = np.fft.irfft(eye_c, n=BS, axis=-1)                          # (nf, BS)
    Di = np.fft.irfft(1j * eye_c, n=BS, axis=-1)[1:nf - 1]           # (nf-2, BS)
    D_frame = noise_att * np.concatenate([Dr, Di], axis=0)           # (BS, BS)

    eye_p = np.eye(P)
    pack = lambda x: np.kron(eye_p, x)                               # block-diagonal
    m_full = np.concatenate([pack(M_frame), pack(Msw_frame)], axis=1)     # (P*n_coef, 2*P*BS)
    cs_full = np.concatenate([pack(CSrd_frame), pack(CSis_frame)], axis=1)  # (P*BS, 2*P*BS)
    d_pack = pack(D_frame)                                                # (P*BS, P*BS)

    to = lambda x: jnp.asarray(x, dtype=basis_dtype)
    return to(m_full), to(cs_full), to(d_pack)


@functools.partial(jax.jit, static_argnames=("filter_size", "block_size",
                                             "noise_att", "basis_dtype"))
def filtered_noise_forward(signal, filter_coef, noise, *, filter_size, block_size,
                           noise_att=1e-4, basis_dtype=jnp.float32):
    F, BS = filter_size, block_size
    n_coef = F // 2 + 1
    B, T = signal.shape
    assert T % BS == 0, "signal length must be a multiple of block_size"
    N = B * (T // BS)                      # number of frames
    assert filter_coef.size == N * n_coef
    assert noise.shape == (N, BS)

    # Pack P consecutive frames per kernel row so every row is 128 lanes wide.
    if BS < 128 and 128 % BS == 0 and N % (128 // BS) == 0:
        P = 128 // BS
    else:
        P = 1
    R = N // P                             # kernel rows
    row = P * BS                           # lane width of one row

    coef = filter_coef.reshape(R, P * n_coef).astype(jnp.float32)
    noise2d = noise.reshape(R, row).astype(jnp.float32)

    # Row tile: large to amortize the ~0.35us/step overhead, but keep >= 4 grid
    # steps when there is enough work so both v7x TensorCores get >= 2 pipelined
    # steps each (coef/noise DMA and writeback stay hidden).  Live VMEM/row is
    # tiny (~4 KB), so 1024-row tiles fit comfortably on every generation.
    if R >= 4096:
        TM = 1024
    elif R >= 64:
        TM = ((R + 3) // 4 + 7) // 8 * 8
    elif R >= 16:
        TM = ((R + 1) // 2 + 7) // 8 * 8
    else:
        TM = R
    grid = pl.cdiv(R, TM)
    R_pad = grid * TM
    if R_pad != R:
        # Zero filter coefs -> zero output on padded tail rows (discarded below).
        coef = jnp.pad(coef, ((0, R_pad - R), (0, 0)))
        noise2d = jnp.pad(noise2d, ((0, R_pad - R), (0, 0)))

    m_full, cs_full, d_pack = make_filtered_noise_params(
        F, BS, P, noise_att, basis_dtype)

    const_spec = lambda shape: pl.BlockSpec(shape, lambda i: (0, 0))

    out = pl.pallas_call(
        _filtered_noise_kernel,
        out_shape=jax.ShapeDtypeStruct((R_pad, row), jnp.float32),
        grid_spec=pltpu.PrefetchScalarGridSpec(
            num_scalar_prefetch=0,
            grid=(grid,),
            in_specs=[
                pl.BlockSpec((TM, P * n_coef), lambda i: (i, 0)),   # filter coefs
                pl.BlockSpec((TM, row), lambda i: (i, 0)),          # noise rows
                const_spec(m_full.shape),    # coef  -> [H | H_sw]
                const_spec(cs_full.shape),   # noise -> [N_rd | N_is]
                const_spec(d_pack.shape),    # [Yr|Yi] -> time (noise_att folded)
            ],
            out_specs=pl.BlockSpec((TM, row), lambda i: (i, 0)),
        ),
        compiler_params=pltpu.CompilerParams(
            dimension_semantics=("parallel",),
            vmem_limit_bytes=32 * 1024 * 1024),
    )(coef, noise2d, m_full, cs_full, d_pack)

    return out[:R].reshape(B, T)


def reference_forward(noise, filter_coef, *, filter_size, block_size):
    """Pure-JAX (jnp.fft) reference of the torch forward, given the same noise
    (noise here already includes the noise_att scaling, like torch's)."""
    F, BS = filter_size, block_size
    n_coef = F // 2 + 1
    coef = filter_coef.reshape(-1, n_coef).astype(jnp.float32)
    n = jnp.arange(F, dtype=jnp.float32)
    window = jnp.roll(0.5 * (1.0 - jnp.cos(2.0 * jnp.pi * n / F)), F // 2)
    h = jnp.fft.irfft(coef.astype(jnp.complex64), n=F, axis=-1)
    h_w = window[None, :] * h
    h_w = jnp.pad(h_w, ((0, 0), (0, BS - F)))
    H = jnp.fft.rfft(h_w, axis=-1)
    S_noise = jnp.fft.rfft(noise, axis=-1)
    return jnp.fft.irfft(H * S_noise, n=BS, axis=-1)


if __name__ == "__main__":
    filter_size = 16
    block_size = 64
    batch = 2
    n_blocks = 4
    noise_att = 1e-4
    n_coef = filter_size // 2 + 1  # == n_parameters()

    key = jax.random.PRNGKey(0)
    k_sig, k_coef, k_noise = jax.random.split(key, 3)

    signal = jax.random.normal(
        k_sig, (batch, n_blocks * block_size), dtype=jnp.float32)
    filter_coef = jax.nn.softplus(
        jax.random.normal(k_coef, (batch, n_blocks, n_coef), dtype=jnp.float32))
    # Host-side standard-normal noise (torch.randn equivalent); the noise_att
    # scaling is folded into the kernel's irfft constant.
    noise = jax.random.normal(
        k_noise, (batch * n_blocks, block_size), dtype=jnp.float32)

    # Strict f32 check.
    out = filtered_noise_forward(
        signal, filter_coef, noise,
        filter_size=filter_size, block_size=block_size, noise_att=noise_att)
    out = jax.block_until_ready(out)

    ref = reference_forward(noise * noise_att, filter_coef,
                            filter_size=filter_size, block_size=block_size)
    ref = np.asarray(ref).reshape(batch, -1)
    scale = float(np.max(np.abs(ref)))

    np.testing.assert_allclose(np.asarray(out), ref,
                               rtol=2e-3, atol=2e-3 * scale)
    assert out.shape == signal.shape and out.dtype == jnp.float32

    # bf16 basis/operands (recommended on the bf16-native v5e/v6e/v7x MXUs);
    # looser tolerance accounts for bf16 operand rounding.
    out_bf16 = jax.block_until_ready(
        filtered_noise_forward(
            signal, filter_coef, noise,
            filter_size=filter_size, block_size=block_size,
            noise_att=noise_att, basis_dtype=jnp.bfloat16))
    np.testing.assert_allclose(np.asarray(out_bf16), ref,
                               rtol=5e-2, atol=5e-2 * scale)

    print("KERNEL_OK")
</pallas_src>

<mosaic_0001>
module attributes {stable_mosaic.version = 11 : i64} {
  func.func @_filtered_noise_kernel(%arg0: i32, %arg1: memref<4x18xf32, #tpu.memory_space<vmem>>, %arg2: memref<4x128xf32, #tpu.memory_space<vmem>>, %arg3: memref<18x256xf32, #tpu.memory_space<vmem>>, %arg4: memref<128x256xf32, #tpu.memory_space<vmem>>, %arg5: memref<128x128xf32, #tpu.memory_space<vmem>>, %arg6: memref<4x128xf32, #tpu.memory_space<vmem>>) attributes {dimension_semantics = [#tpu.dimension_semantics<parallel>], iteration_bounds = array<i64: 1>, scalar_prefetch = 0 : i64, scratch_operands = 0 : i64, tpu.core_type = #tpu.core_type<tc>, window_params = [{transform_indices = @transform_0, window_bounds = array<i64: 4, 18>}, {transform_indices = @transform_1, window_bounds = array<i64: 4, 128>}, {pipeline_mode = #tpu.pipeline_mode<synchronous>, transform_indices = @transform_2, window_bounds = array<i64: 18, 256>}, {pipeline_mode = #tpu.pipeline_mode<synchronous>, transform_indices = @transform_3, window_bounds = array<i64: 128, 256>}, {pipeline_mode = #tpu.pipeline_mode<synchronous>, transform_indices = @transform_4, window_bounds = array<i64: 128, 128>}, {transform_indices = @transform_5, window_bounds = array<i64: 4, 128>}]} {
    %c0 = arith.constant 0 : index
    %c0_0 = arith.constant 0 : index
    %0 = vector.load %arg1[%c0, %c0_0] : memref<4x18xf32, #tpu.memory_space<vmem>>, vector<4x18xf32>
    %c0_1 = arith.constant 0 : index
    %c0_2 = arith.constant 0 : index
    %1 = vector.load %arg2[%c0_1, %c0_2] : memref<4x128xf32, #tpu.memory_space<vmem>>, vector<4x128xf32>
    %c0_3 = arith.constant 0 : index
    %c0_4 = arith.constant 0 : index
    %2 = vector.load %arg3[%c0_3, %c0_4] : memref<18x256xf32, #tpu.memory_space<vmem>>, vector<18x256xf32>
    %cst = arith.constant dense<0.000000e+00> : vector<4x256xf32>
    %3 = tpu.matmul %0, %2, %cst {dimension_numbers = #tpu.dot_dimension_numbers<[1], [0], [0], [1], [0, 0, 1, 1], [], []>} : vector<4x18xf32>, vector<18x256xf32>, vector<4x256xf32> -> vector<4x256xf32>
    %c0_5 = arith.constant 0 : index
    %c0_6 = arith.constant 0 : index
    %4 = vector.load %arg4[%c0_5, %c0_6] : memref<128x256xf32, #tpu.memory_space<vmem>>, vector<128x256xf32>
    %cst_7 = arith.constant dense<0.000000e+00> : vector<4x256xf32>
    %5 = tpu.matmul %1, %4, %cst_7 {dimension_numbers = #tpu.dot_dimension_numbers<[1], [0], [0], [1], [0, 0, 1, 1], [], []>} : vector<4x128xf32>, vector<128x256xf32>, vector<4x256xf32> -> vector<4x256xf32>
    %6 = vector.extract_strided_slice %3 {offsets = [0, 0], sizes = [4, 128], strides = [1, 1]} : vector<4x256xf32> to vector<4x128xf32>
    %7 = vector.extract_strided_slice %5 {offsets = [0, 0], sizes = [4, 128], strides = [1, 1]} : vector<4x256xf32> to vector<4x128xf32>
    %8 = arith.mulf %6, %7 : vector<4x128xf32>
    %9 = vector.extract_strided_slice %3 {offsets = [0, 128], sizes = [4, 128], strides = [1, 1]} : vector<4x256xf32> to vector<4x128xf32>
    %10 = vector.extract_strided_slice %5 {offsets = [0, 128], sizes = [4, 128], strides = [1, 1]} : vector<4x256xf32> to vector<4x128xf32>
    %11 = arith.mulf %9, %10 : vector<4x128xf32>
    %12 = arith.addf %8, %11 : vector<4x128xf32>
    %c0_8 = arith.constant 0 : index
    %c0_9 = arith.constant 0 : index
    %13 = vector.load %arg5[%c0_8, %c0_9] : memref<128x128xf32, #tpu.memory_space<vmem>>, vector<128x128xf32>
    %cst_10 = arith.constant dense<0.000000e+00> : vector<4x128xf32>
    %14 = tpu.matmul %12, %13, %cst_10 {dimension_numbers = #tpu.dot_dimension_numbers<[1], [0], [0], [1], [0, 0, 1, 1], [], []>} : vector<4x128xf32>, vector<128x128xf32>, vector<4x128xf32> -> vector<4x128xf32>
    %c0_11 = arith.constant 0 : index
    %c0_12 = arith.constant 0 : index
    %15 = vector.load %arg6[%c0_11, %c0_12] : memref<4x128xf32, #tpu.memory_space<vmem>>, vector<4x128xf32>
    tpu.vector_store %arg6[%c0_11, %c0_12], %14 {strides = array<i32>} : memref<4x128xf32, #tpu.memory_space<vmem>>, vector<4x128xf32>,
    return
  }
  func.func @transform_0(%arg0: i32) -> (i32, i32) {
    %c0_i32 = arith.constant 0 : i32
    %c0_i32_0 = arith.constant 0 : i32
    return %arg0, %c0_i32 : i32, i32
  }
  func.func @transform_1(%arg0: i32) -> (i32, i32) {
    %c0_i32 = arith.constant 0 : i32
    %c0_i32_0 = arith.constant 0 : i32
    return %arg0, %c0_i32 : i32, i32
  }
  func.func @transform_2(%arg0: i32) -> (i32, i32) {
    %c0_i32 = arith.constant 0 : i32
    %c0_i32_0 = arith.constant 0 : i32
    %c0_i32_1 = arith.constant 0 : i32
    return %c0_i32, %c0_i32_0 : i32, i32
  }
  func.func @transform_3(%arg0: i32) -> (i32, i32) {
    %c0_i32 = arith.constant 0 : i32
    %c0_i32_0 = arith.constant 0 : i32
    %c0_i32_1 = arith.constant 0 : i32
    return %c0_i32, %c0_i32_0 : i32, i32
  }
  func.func @transform_4(%arg0: i32) -> (i32, i32) {
    %c0_i32 = arith.constant 0 : i32
    %c0_i32_0 = arith.constant 0 : i32
    %c0_i32_1 = arith.constant 0 : i32
    return %c0_i32, %c0_i32_0 : i32, i32
  }
  func.func @transform_5(%arg0: i32) -> (i32, i32) {
    %c0_i32 = arith.constant 0 : i32
    %c0_i32_0 = arith.constant 0 : i32
    return %arg0, %c0_i32 : i32, i32
  }
}

</mosaic_0001>

<bundles_post_ra>
// kernel: filtered_noise_forward.1
= control target key start
LH: loop header
LB: loop body
LE: loop exit
PB: predicated region body
PF: predicated region fallthrough
CT: control target
= control target key end

     0   :  { %10 = vsyncpa [#allocation3], 0  ;;  %s642_s0 = inlined_call_operand.vmem [shape: f32[4,18], index: 0, kind: input, shape index: {}]   ;;  %s643_s1 = inlined_call_operand.vmem [shape: f32[4,128], index: 1, kind: input, shape index: {}]   ;;  %s644_s2 = inlined_call_operand.hbm [shape: f32[18,256], index: 2, kind: input, shape index: {}]   ;;  %s645_s3 = inlined_call_operand.hbm [shape: f32[128,256], index: 3, kind: input, shape index: {}]   ;;  %s646_s4 = inlined_call_operand.hbm [shape: f32[128,128], index: 4, kind: input, shape index: {}]   ;;  %s647_s5 = inlined_call_operand.vmem [shape: f32[4,128], index: 5, kind: output, shape index: {}]  }
   0x1   :  { %11 = vsyncpa [#allocation5], 0  ;;  %s545_s18 = smov [#allocation4]   ;;  %s546_s20 = smov [#allocation2]  }
   0x2   :  { %s33_s19 = sshll.u32 %s545_s18, 4  ;;  %s21_s21 = sshll.u32 %s546_s20, 4  ;;  %s34_s19 = int_to_ptr.vmem [resolvable:$true] %s33_s19  ;;  %s585_s21 = int_to_ptr.vmem [resolvable:$true] %s21_s21 }
   0x3   :  { %s475_s24 = scalar_lea.hbm %s645_s3, 4096 }
   0x4   :  { %p476_p0 = scmp.ne.s32.totalorder %s645_s3, %s475_s24  ;;  %p479_p1 = scmp.lt.u32.totalorder %s475_s24, %s645_s3 }
   0x6   :  { %p481_p2 = pnand %p479_p1, %p476_p0 }
   0x8   :  { %484 = shalt.err (!%p481_p2)
}
   0x9   :  { %s485_s29 = scalar_lea.vmem %s34_s19, 4096  ;;  %p490_p4 = scmp.lt.s32.totalorder %s34_s19, %s34_s19 }
   0xa   :  { %p486_p3 = scmp.ne.s32.totalorder %s34_s19, %s485_s29  ;;  %p491_p5 = scmp.lt.s32.totalorder %s485_s29, %s485_s29 }
   0xc   :  { %p492_p6 = por %p491_p5, %p490_p4 }
   0xe   :  { %p493_p7 = pnand %p492_p6, %p486_p3 }
  0x10   :  { %496 = shalt.err (!%p493_p7)
}
  0x11   :  { %s547_s30 = smov 256   ;;  %s548_s6 = smov 16  }
  0x12   :  { %39 = dma.hbm_to_vmem [thread:$0]  %s645_s3, 4096, %s34_s19, [#allocation5], %s547_s30, %s547_s30, %s548_s6  }
  0x13   :  { %s497_s11 = scalar_lea.hbm %s644_s2, 768 }
  0x14   :  { %p498_p8 = scmp.ne.s32.totalorder %s644_s2, %s497_s11  ;;  %p501_p9 = scmp.lt.u32.totalorder %s497_s11, %s644_s2 }
  0x16   :  { %p503_p10 = pnand %p501_p9, %p498_p8 }
  0x18   :  { %506 = shalt.err (!%p503_p10)
}
  0x19   :  { %s507_s16 = scalar_lea.vmem %s585_s21, 768  ;;  %p512_p12 = scmp.lt.s32.totalorder %s585_s21, %s585_s21 }
  0x1a   :  { %p508_p11 = scmp.ne.s32.totalorder %s585_s21, %s507_s16  ;;  %p513_p13 = scmp.lt.s32.totalorder %s507_s16, %s507_s16 }
  0x1c   :  { %p514_p0 = por %p513_p13, %p512_p12 }
  0x1e   :  { %p515_p1 = pnand %p514_p0, %p508_p11 }
  0x20   :  { %518 = shalt.err (!%p515_p1)
}
  0x21   :  { %27 = dma.hbm_to_vmem [thread:$0]  %s644_s2, 768, %s585_s21, [#allocation3], %s547_s30, %s547_s30, %s548_s6  }
  0x22   :  { %s549_s18 = smov [#allocation6]   ;;  %s519_s23 = scalar_lea.hbm %s646_s4, 2048 }
  0x23   :  { %s45_s19 = sshll.u32 %s549_s18, 4  ;;  %p520_p2 = scmp.ne.s32.totalorder %s646_s4, %s519_s23  ;;  %s46_s19 = int_to_ptr.vmem [resolvable:$true] %s45_s19 }
  0x24   :  { %p523_p3 = scmp.lt.u32.totalorder %s519_s23, %s646_s4 }
  0x26   :  { %p525_p4 = pnand %p523_p3, %p520_p2 }
  0x28   :  { %528 = shalt.err (!%p525_p4)
}
  0x29   :  { %s529_s28 = scalar_lea.vmem %s46_s19, 2048  ;;  %p534_p6 = scmp.lt.s32.totalorder %s46_s19, %s46_s19 }
  0x2a   :  { %p530_p5 = scmp.ne.s32.totalorder %s46_s19, %s529_s28  ;;  %p535_p7 = scmp.lt.s32.totalorder %s529_s28, %s529_s28 }
  0x2c   :  { %p536_p8 = por %p535_p7, %p534_p6 }
  0x2e   :  { %p537_p9 = pnand %p536_p8, %p530_p5 }
  0x30   :  { %540 = shalt.err (!%p537_p9)
}
  0x31   :  { %s550_s2 = smov 128   ;;  %s551_s21 = smov 8  }
  0x32   :  { %51 = dma.hbm_to_vmem [thread:$0]  %s646_s4, 2048, %s46_s19, [#allocation5], %s550_s2, %s550_s2, %s551_s21  }
  0x33   :  { %541 = dma.done.wait [#allocation3], 768  }
  0x34   :  { %542 = vsyncadd [#allocation3], 4294966528 }
  0x35   :  { %543 = dma.done.wait [#allocation5], 6144  }
  0x36   :  { %544 = vsyncadd [#allocation5], 4294961152  ;;  %v552_v0 = vmov 0.0   ;;  %v152_v1 = vld [vmem:[#allocation4 + $0x8] sm:$0xff]  ;;  %v154_v2 = vld [vmem:[#allocation4 + $0x18] sm:$0xff]  ;;  %vm73_vm0 = vcmask 1041408  }
  0x37   :  { %144 = vmatprep.mubr.f32.mxu0 %v552_v0  ;;  %247 = vmatprep.mubr.f32.mxu1 %v552_v0  ;;  %v151_v3 = vld [vmem:[#allocation4] sm:$0xff]  ;;  %v409_v4 = vpack.c.bf16 %v154_v2, %v152_v1  ;;  %v153_v5 = vld [vmem:[#allocation4 + $0x10] sm:$0xff]  ;;  %v156_v6 = vld [vmem:[#allocation4 + $0x28] sm:$0xff]  ;;  %vm69_vm1 = vcmask 146432   ;;  %v553_v52 = vmov 0.0|0.0   ;;  %vm554_vm2 = vmmov 0  }
  0x38   :  { %v158_v7 = vld [vmem:[#allocation4 + $0x38] sm:$0xff]  ;;  %v411_v8 = vpack.c.bf16 %v153_v5, %v151_v3  ;;  %v155_v10 = vld [vmem:[#allocation4 + $0x20] sm:$0xff]  ;;  %v157_v11 = vld [vmem:[#allocation4 + $0x30] sm:$0xff] }
  0x39   :  { %v413_v9 = vpack.c.bf16 %v158_v7, %v156_v6  ;;  %v160_v12 = vld [vmem:[#allocation4 + $0x48] sm:$0xff]  ;;  %410 = vmatprep.subr.bf16.mxu1 %v409_v4  ;;  %v162_v13 = vld [vmem:[#allocation4 + $0x58] sm:$0xff]  ;;  %v415_v14 = vpack.c.bf16 %v157_v11, %v155_v10  ;;  %v159_v16 = vld [vmem:[#allocation4 + $0x40] sm:$0xff] }
  0x3a   :  { %412 = vmatpush1.bf16.msra.mxu1 %v411_v8  ;;  %v417_v15 = vpack.c.bf16 %v162_v13, %v160_v12  ;;  %v161_v17 = vld [vmem:[#allocation4 + $0x50] sm:$0xff]  ;;  %v164_v18 = vld [vmem:[#allocation4 + $0x68] sm:$0xff]  ;;  %v166_v19 = vld [vmem:[#allocation4 + $0x78] sm:$0xff] }
  0x3b   :  { %414 = vmatprep.subr.bf16.mxu1 %v413_v9  ;;  %v419_v20 = vpack.c.bf16 %v161_v17, %v159_v16  ;;  %v163_v21 = vld [vmem:[#allocation4 + $0x60] sm:$0xff]  ;;  %v64_v22 = vld [vmem:[#allocation2 + $0x8] sm:$0xff]  ;;  %v421_v23 = vpack.c.bf16 %v166_v19, %v164_v18  ;;  %v165_v24 = vld [vmem:[#allocation4 + $0x70] sm:$0xff] }
  0x3c   :  { %v168_v25 = vld [vmem:[#allocation4 + $0x88] sm:$0xff]  ;;  %v170_v27 = vld [vmem:[#allocation4 + $0x98] sm:$0xff]  ;;  %v63_v29 = vld [vmem:[#allocation2] sm:$0xff]  ;;  %v423_v33 = vpack.c.bf16 %v165_v24, %v163_v21 }
  0x3d   :  { %v66_v26 = vld [vmem:[#allocation2 + $0x18] sm:$0xff]  ;;  %v65_v30 = vld [vmem:[#allocation2 + $0x10] sm:$0xff]  ;;  %v68_v32 = vld [vmem:[#allocation2 + $0x28] sm:$0x3]  ;;  %v425_v35 = vpack.c.bf16 %v170_v27, %v168_v25 }
  0x3e   :  { %416 = vmatpush1.bf16.msra.mxu1 %v415_v14  ;;  %v405_v28 = vpack.c.bf16 %v66_v26, %v64_v22  ;;  %v407_v31 = vpack.c.bf16 %v65_v30, %v63_v29  ;;  %v167_v34 = vld [vmem:[#allocation4 + $0x80] sm:$0xff]  ;;  %v169_v36 = vld [vmem:[#allocation4 + $0x90] sm:$0xff]  ;;  %v258_v38 = vld [vmem:[#allocation6 + $0x8] sm:$0xff] }
  0x3f   :  { %418 = vmatprep.subr.bf16.mxu1 %v417_v15  ;;  %v257_v37 = vld [vmem:[#allocation6] sm:$0xff]  ;;  %v172_v39 = vld [vmem:[#allocation4 + $0xa8] sm:$0xff]  ;;  %v174_v40 = vld [vmem:[#allocation4 + $0xb8] sm:$0xff]  ;;  %v427_v44 = vpack.c.bf16 %v169_v36, %v167_v34 }
  0x40   :  { %406 = vmatprep.subr.bf16.mxu0 %v405_v28  ;;  %v67_v41 = vld [vmem:[#allocation2 + $0x20] sm:$0x3]  ;;  %v61_v42 = vld [vmem:[%s642_s0] sm:$0xf]  ;;  %v442_v43 = vpack.c.bf16 %v258_v38, %v257_v37  ;;  %v260_v46 = vld [vmem:[#allocation6 + $0x18] sm:$0xff]  ;;  %v429_v47 = vpack.c.bf16 %v174_v40, %v172_v39 }
  0x41   :  { %408 = vmatpush1.bf16.msra.mxu0 %v407_v31  ;;  %v259_v45 = vld [vmem:[#allocation6 + $0x10] sm:$0xff]  ;;  %v171_v48 = vld [vmem:[#allocation4 + $0xa0] sm:$0xff]  ;;  %v176_v50 = vld [vmem:[#allocation4 + $0xc8] sm:$0xff] }
  0x42   :  { %420 = vmatpush1.bf16.msra.mxu1 %v419_v20  ;;  %350 = vmatprep.subr.msk.mxu0 %vm73_vm0, %v68_v32  ;;  %v173_v49 = vld [vmem:[#allocation4 + $0xb0] sm:$0xff]  ;;  %v178_v51 = vld [vmem:[#allocation4 + $0xd8] sm:$0xff]  ;;  %v445_v53 = vpack.c.bf16 %v260_v46, %v259_v45  ;;  %v261_v55 = vld [vmem:[#allocation6 + $0x20] sm:$0xff] }
  0x43   :  { %422 = vmatprep.subr.bf16.mxu1 %v421_v23  ;;  %v431_v54 = vpack.c.bf16 %v173_v49, %v171_v48  ;;  %v262_v56 = vld [vmem:[#allocation6 + $0x28] sm:$0xff]  ;;  %v433_v57 = vpack.c.bf16 %v178_v51, %v176_v50  ;;  %v175_v58 = vld [vmem:[#allocation4 + $0xc0] sm:$0xff]  ;;  %v177_v59 = vld [vmem:[#allocation4 + $0xd0] sm:$0xff] }
  0x44   :  { %v180_v60 = vld [vmem:[#allocation4 + $0xe8] sm:$0xff]  ;;  %v182_v61 = vld [vmem:[#allocation4 + $0xf8] sm:$0xff]  ;;  %v448_v62 = vpack.c.bf16 %v262_v56, %v261_v55  ;;  %v435_v63 = vpack.c.bf16 %v177_v59, %v175_v58  ;;  %v263_v1 = vld [vmem:[#allocation6 + $0x30] sm:$0xff] }
  0x45   :  { %351 = vmatpush1.msk.msra.mxu0 %vm73_vm0, %v67_v41  ;;  %v264_v2 = vld [vmem:[#allocation6 + $0x38] sm:$0xff]  ;;  %v437_v3 = vpack.c.bf16 %v182_v61, %v180_v60  ;;  %v179_v4 = vld [vmem:[#allocation4 + $0xe0] sm:$0xff]  ;;  %v181_v5 = vld [vmem:[#allocation4 + $0xf0] sm:$0xff] }
  0x46   :  { %424 = vmatpush1.bf16.msra.mxu1 %v423_v33  ;;  %352 = vmatmul.mubr.msk.f32.vlgmr.msra.gmra.mrb[0].mxu0 %vm69_vm1, %v61_v42  ;;  %v451_v6 = vpack.c.bf16 %v264_v2, %v263_v1  ;;  %v439_v7 = vpack.c.bf16 %v181_v5, %v179_v4  ;;  %v265_v8 = vld [vmem:[#allocation6 + $0x40] sm:$0xff]  ;;  %v266_v9 = vld [vmem:[#allocation6 + $0x48] sm:$0xff]  ;;  %v267_v12 = vld [vmem:[#allocation6 + $0x50] sm:$0xff] }
  0x47   :  { %426 = vmatprep.subr.bf16.mxu1 %v425_v35  ;;  %441 = vmatprep.subr.bf16.mxu0 %v553_v52  ;;  %v454_v10 = vpack.c.bf16 %v266_v9, %v265_v8  ;;  %v62_v11 = vld [vmem:[%s643_s1] sm:$0xf]  ;;  %v268_v13 = vld [vmem:[#allocation6 + $0x58] sm:$0xff]  ;;  %v269_v15 = vld [vmem:[#allocation6 + $0x60] sm:$0xff] }
  0x48   :  { %443 = vmatpush3.bf16.msra.mxu0 %v442_v43  ;;  %v457_v14 = vpack.c.bf16 %v268_v13, %v267_v12  ;;  %v270_v16 = vld [vmem:[#allocation6 + $0x68] sm:$0xff]  ;;  %v271_v18 = vld [vmem:[#allocation6 + $0x70] sm:$0xff]  ;;  %v272_v19 = vld [vmem:[#allocation6 + $0x78] sm:$0xff]  ;;  %402 = vmatprep.mubr.msk.f32.mxu0 %vm554_vm2, %v552_v0 }
  0x49   :  { %444 = vmatprep.subr.bf16.mxu0 %v553_v52  ;;  %v460_v17 = vpack.c.bf16 %v270_v16, %v269_v15  ;;  %v463_v20 = vpack.c.bf16 %v272_v19, %v271_v18 }
  0x4a   :  { %428 = vmatpush1.bf16.msra.mxu1 %v427_v44 }
  0x4b   :  { %430 = vmatprep.subr.bf16.mxu1 %v429_v47 }
  0x4c   :  { %446 = vmatpush3.bf16.msra.mxu0 %v445_v53 }
  0x4d   :  { %447 = vmatprep.subr.bf16.mxu0 %v553_v52 }
  0x4e   :  { %432 = vmatpush1.bf16.msra.mxu1 %v431_v54 }
  0x4f   :  { %434 = vmatprep.subr.bf16.mxu1 %v433_v57 }
  0x50   :  { %449 = vmatpush3.bf16.msra.mxu0 %v448_v62 }
  0x51   :  { %450 = vmatprep.subr.bf16.mxu0 %v553_v52 }
  0x52   :  { %436 = vmatpush1.bf16.msra.mxu1 %v435_v63 }
  0x53   :  { %438 = vmatprep.subr.bf16.mxu1 %v437_v3 }
  0x54   :  { %452 = vmatpush3.bf16.msra.mxu0 %v451_v6 }
  0x55   :  { %453 = vmatprep.subr.bf16.mxu0 %v553_v52 }
  0x56   :  { %440 = vmatpush1.bf16.msra.mxu1 %v439_v7 }
  0x58   :  { %455 = vmatpush3.bf16.msra.mxu0 %v454_v10 }
  0x59   :  { %248 = vmatmul.mubr.f32.vlgmr.msra.gmra.mrb[0].mxu1 %v62_v11  ;;  %456 = vmatprep.subr.bf16.mxu0 %v553_v52 }
  0x5c   :  { %458 = vmatpush3.bf16.msra.mxu0 %v457_v14 }
  0x5d   :  { %459 = vmatprep.subr.bf16.mxu0 %v553_v52 }
  0x60   :  { %461 = vmatpush3.bf16.msra.mxu0 %v460_v17 }
  0x61   :  { %462 = vmatprep.subr.bf16.mxu0 %v553_v52 }
  0x64   :  { %464 = vmatpush3.bf16.msra.mxu0 %v463_v20 }
 0x119   :  { %v146_v21 = vpop.f32.mrb[0].mxu0 }
 0x11a   :  { %v148_v22 = vpop.f32.mrb[1].mxu0 }
 0x12c   :  { %v249_v23 = vpop.f32.mrb[0].mxu1 }
 0x12d   :  { %v254_v24 = vmul.f32 %v249_v23, %v146_v21  ;;  %v251_v25 = vpop.f32.mrb[1].mxu1 }
 0x12e   :  { %v255_v26 = vmul.f32 %v251_v25, %v148_v22 }
 0x130   :  { %v256_v27 = vadd.f32 %v255_v26, %v254_v24 }
 0x132   :  { %403 = vmatmul.mubr.f32.vlgmr.msra.gmra.mrb[2].mxu0 %v256_v27 }
 0x205   :  { %v339_v28 = vpop.f32.mrb[2].mxu0 }
 0x206   :  { %343 = vst [vmem:[%s647_s5] sm:$0xf] %v339_v28  ;;  %v404_v29 = vpop.f32.mrb[3].mxu0 }
 0x207   :  { %348 = vsyncpa [#allocation3], 1 }
 0x208   :  { %349 = vsyncpa [#allocation5], 1 }

</bundles_post_ra>
